<compile_context>
chip_gen: v5e
topology: v5e:2x2
jax: 0.10.0
libtpu: 0.0.40
codegen_flags: <defaults>
</compile_context>

<pallas_src>
import functools

import jax
import jax.numpy as jnp
from jax.experimental import pallas as pl
from jax.experimental.pallas import tpu as pltpu

BN_EPS = 1e-5
GROUPS = 32
REDUCTION = 16
STAGE_CFG = [  # (planes, n_blocks, first_stride) for se_resnext101_32x4d
    (64, 3, 1),
    (128, 4, 2),
    (256, 23, 2),
    (512, 3, 2),
]

_VMEM_LIMIT = 48 * 1024 * 1024  # <= v7x 64 MiB physical VMEM, > v5e/v6e defaults


# ----------------------------------------------------------- tile choosers --
def _pick_lane(d, pref):
    """Tile for dims that land in the lane position: multiple of 128 or full."""
    for t in (pref, 512, 256, 128):
        if t <= d and d % t == 0:
            return t
    return d


def _pick_sub(d, pref):
    """Tile for sublane-position dims: multiple of 8 or full."""
    for t in (pref, 512, 256, 128, 64, 32, 16, 8):
        if t <= d and d % t == 0:
            return t
    return d


# ------------------------------------------------ fused matmul + BN (+ReLU) --
def _mm_affine_kernel(a_ref, b_ref, s_ref, c_ref, o_ref, acc_ref, *, act):
    @pl.when(pl.program_id(2) == 0)
    def _():
        acc_ref[...] = jnp.zeros_like(acc_ref)

    acc_ref[...] += jnp.dot(a_ref[...], b_ref[...],
                            preferred_element_type=jnp.float32)

    @pl.when(pl.program_id(2) == pl.num_programs(2) - 1)
    def _():
        y = acc_ref[...] * s_ref[...] + c_ref[...]
        if act == "relu":
            y = jnp.maximum(y, 0.0)
        o_ref[...] = y.astype(o_ref.dtype)


@functools.partial(jax.jit, static_argnames=("act",))
def matmul_affine(a, b, scale, bias, act="none"):
    """out = act((a @ b) * scale + bias).  a:[M,K] bf16, b:[K,N] bf16."""
    M, K = a.shape
    K2, N = b.shape
    assert K == K2
    tm = _pick_sub(M, 256)
    tn = _pick_lane(N, 256)
    tk = _pick_lane(K, 512)
    grid = (M // tm, N // tn, K // tk)
    return pl.pallas_call(
        functools.partial(_mm_affine_kernel, act=act),
        out_shape=jax.ShapeDtypeStruct((M, N), jnp.bfloat16),
        grid_spec=pltpu.PrefetchScalarGridSpec(
            num_scalar_prefetch=0,
            grid=grid,
            in_specs=[
                pl.BlockSpec((tm, tk), lambda i, j, k: (i, k)),
                pl.BlockSpec((tk, tn), lambda i, j, k: (k, j)),
                pl.BlockSpec((1, tn), lambda i, j, k: (0, j)),
                pl.BlockSpec((1, tn), lambda i, j, k: (0, j)),
            ],
            out_specs=pl.BlockSpec((tm, tn), lambda i, j, k: (i, j)),
            scratch_shapes=[pltpu.VMEM((tm, tn), jnp.float32)]),
        compiler_params=pltpu.CompilerParams(
            dimension_semantics=("parallel", "parallel", "arbitrary"),
            vmem_limit_bytes=_VMEM_LIMIT),
    )(a, b, scale, bias)


@functools.partial(jax.jit, static_argnames=("act", "stride"))
def conv1x1_bn_act(x, w, scale, bias, act="relu", stride=1):
    """1x1 conv (+ folded BN, + optional ReLU).  x:[N,H,W,Cin] bf16."""
    if stride > 1:
        x = x[:, ::stride, ::stride, :]
    n, h, ww, cin = x.shape
    cout = w.shape[1]
    y = matmul_affine(x.reshape(n * h * ww, cin), w, scale, bias, act=act)
    return y.reshape(n, h, ww, cout)


# ----------------------------------------------------- phase (s2d) splitting --
def _phase_split(xp, stride, pad_val):
    """[N,Hp,Wp,C] -> [N, s*s, ceil(Hp/s), ceil(Wp/s), C].

    Phase p = a*s + b holds xp[:, a::s, b::s, :].  For stride=1 this is the
    identity with a singleton phase axis.  Lets the conv/maxpool kernels use
    only static contiguous slices (no strided ref access) for stride 2.
    """
    n, hp, wp, c = xp.shape
    if stride == 1:
        return xp.reshape(n, 1, hp, wp, c)
    hq = -(-hp // stride)
    wq = -(-wp // stride)
    xpp = jnp.pad(xp, ((0, 0), (0, hq * stride - hp),
                       (0, wq * stride - wp), (0, 0)),
                  constant_values=pad_val)
    x6 = xpp.reshape(n, hq, stride, wq, stride, c)
    x6 = jnp.transpose(x6, (0, 2, 4, 1, 3, 5))
    return x6.reshape(n, stride * stride, hq, wq, c)


def _taps(k, stride):
    return tuple(((kh % stride) * stride + (kw % stride), kh // stride,
                  kw // stride) for kh in range(k) for kw in range(k))


# ------------------------------------------- grouped 3x3 conv + BN + ReLU ----
def _gconv_kernel(x_ref, w_ref, s_ref, c_ref, o_ref, *, taps, ho, wo):
    m = ho * wo
    cb = o_ref.shape[-1]
    acc = jnp.zeros((m, cb), jnp.float32)
    for t, (p, dh, dw) in enumerate(taps):
        a = x_ref[0, p, dh:dh + ho, dw:dw + wo, :].reshape(m, cb)
        acc = acc + jnp.dot(a, w_ref[t, 0],
                            preferred_element_type=jnp.float32)
    y = jnp.maximum(acc * s_ref[...] + c_ref[...], 0.0)
    o_ref[...] = y.reshape(o_ref.shape).astype(o_ref.dtype)


@functools.partial(jax.jit, static_argnames=("stride",))
def conv3x3_grouped_bn_relu(x, wdiag, scale, bias, stride=1):
    """Grouped (32) 3x3 conv + folded BN + ReLU, directly from NHWC (no im2col).

    wdiag: [9, C//128, 128, 128] -- only the 128x128 tiles on the group
    diagonal; output tile j consumes exactly input channels [128j, 128j+128).
    """
    n, h, w, c = x.shape
    ho = (h - 1) // stride + 1
    wo = (w - 1) // stride + 1
    xp = jnp.pad(x, ((0, 0), (1, 1), (1, 1), (0, 0)))
    xph = _phase_split(xp, stride, 0.0)
    _, np_, hq, wq, _ = xph.shape
    taps = _taps(3, stride)
    ntile = c // 128
    return pl.pallas_call(
        functools.partial(_gconv_kernel, taps=taps, ho=ho, wo=wo),
        out_shape=jax.ShapeDtypeStruct((n, ho, wo, c), jnp.bfloat16),
        grid_spec=pltpu.PrefetchScalarGridSpec(
            num_scalar_prefetch=0,
            grid=(n, ntile),
            in_specs=[
                pl.BlockSpec((1, np_, hq, wq, 128),
                             lambda i, j: (i, 0, 0, 0, j)),
                pl.BlockSpec((9, 1, 128, 128), lambda i, j: (0, j, 0, 0)),
                pl.BlockSpec((1, 128), lambda i, j: (0, j)),
                pl.BlockSpec((1, 128), lambda i, j: (0, j)),
            ],
            out_specs=pl.BlockSpec((1, ho, wo, 128),
                                   lambda i, j: (i, 0, 0, j)),
        ),
        compiler_params=pltpu.CompilerParams(
            dimension_semantics=("parallel", "parallel"),
            vmem_limit_bytes=_VMEM_LIMIT),
    )(xph, wdiag, scale, bias)


# ------------------------------------------------------------------ maxpool --
def _maxpool_kernel(x_ref, o_ref, *, taps, ho, wo):
    best = None
    for (p, dh, dw) in taps:
        a = x_ref[0, p, dh:dh + ho, dw:dw + wo, :]
        best = a if best is None else jnp.maximum(best, a)
    o_ref[...] = best.reshape(o_ref.shape)


@jax.jit
def maxpool_3x3_s2_ceil(x):  # matches nn.MaxPool2d(3, stride=2, ceil_mode=True)
    n, h, w, c = x.shape
    ho = -(-(h - 3) // 2) + 1
    wo = -(-(w - 3) // 2) + 1
    hp = 2 * (ho - 1) + 3
    wp = 2 * (wo - 1) + 3
    xp = jnp.pad(x, ((0, 0), (0, hp - h), (0, wp - w), (0, 0)),
                 constant_values=float("-inf"))
    xph = _phase_split(xp, 2, float("-inf"))
    _, np_, hq, wq, _ = xph.shape
    taps = _taps(3, 2)
    return pl.pallas_call(
        functools.partial(_maxpool_kernel, taps=taps, ho=ho, wo=wo),
        out_shape=jax.ShapeDtypeStruct((n, ho, wo, c), x.dtype),
        grid_spec=pltpu.PrefetchScalarGridSpec(
            num_scalar_prefetch=0,
            grid=(n,),
            in_specs=[pl.BlockSpec((1, np_, hq, wq, c),
                                   lambda i: (i, 0, 0, 0, 0))],
            out_specs=pl.BlockSpec((1, ho, wo, c), lambda i: (i, 0, 0, 0)),
        ),
        compiler_params=pltpu.CompilerParams(
            dimension_semantics=("parallel",),
            vmem_limit_bytes=_VMEM_LIMIT),
    )(xph)


# ------------------------------------------------------- global average pool --
def _gap_kernel(x_ref, o_ref, *, inv):
    @pl.when(pl.program_id(1) == 0)
    def _():
        o_ref[...] = jnp.zeros_like(o_ref)

    o_ref[...] += jnp.sum(x_ref[...].astype(jnp.float32), axis=1,
                          keepdims=True) * inv


@jax.jit
def global_avg_pool(x):  # [N, H, W, C] -> [N, C] f32 (AdaptiveAvgPool2d((1,1)))
    n, h, w, c = x.shape
    hw = h * w
    x3 = x.reshape(n, hw, c)
    thw = _pick_sub(hw, 512)
    out = pl.pallas_call(
        functools.partial(_gap_kernel, inv=1.0 / hw),
        out_shape=jax.ShapeDtypeStruct((n, 1, c), jnp.float32),
        grid_spec=pltpu.PrefetchScalarGridSpec(
            num_scalar_prefetch=0,
            grid=(n, hw // thw),
            in_specs=[pl.BlockSpec((1, thw, c), lambda i, j: (i, j, 0))],
            out_specs=pl.BlockSpec((1, 1, c), lambda i, j: (i, 0, 0)),
        ),
        compiler_params=pltpu.CompilerParams(
            dimension_semantics=("parallel", "arbitrary"),
            vmem_limit_bytes=_VMEM_LIMIT),
    )(x3)
    return out.reshape(n, c)


# -------------------------------------------------- SE gate (tiny, un-gridded)
def _se_gate_kernel(p_ref, w1_ref, b1_ref, w2_ref, b2_ref, g_ref):
    h = jnp.dot(p_ref[...], w1_ref[...],
                preferred_element_type=jnp.float32) + b1_ref[...]
    h = jnp.maximum(h, 0.0)
    g = jnp.dot(h, w2_ref[...],
                preferred_element_type=jnp.float32) + b2_ref[...]
    g_ref[...] = 1.0 / (1.0 + jnp.exp(-g))


@jax.jit
def se_gate(pooled, w1, b1, w2, b2):  # [N, C] -> sigmoid gate [N, C]
    n, c = pooled.shape
    return pl.pallas_call(
        _se_gate_kernel,
        out_shape=jax.ShapeDtypeStruct((n, c), jnp.float32),
    )(pooled, w1, b1, w2, b2)


# --------------------------------- fused SE-scale + residual add + ReLU ------
def _se_res_relu_kernel(x_ref, g_ref, r_ref, o_ref):
    y = x_ref[...].astype(jnp.float32) * g_ref[...] + \
        r_ref[...].astype(jnp.float32)
    o_ref[...] = jnp.maximum(y, 0.0).astype(o_ref.dtype)


@jax.jit
def se_res_relu(x, gate, res):
    n, h, w, c = x.shape
    hw = h * w
    x3 = x.reshape(n, hw, c)
    r3 = res.reshape(n, hw, c)
    g3 = gate.reshape(n, 1, c)
    thw = _pick_sub(hw, 512)
    out = pl.pallas_call(
        _se_res_relu_kernel,
        out_shape=jax.ShapeDtypeStruct((n, hw, c), jnp.bfloat16),
        grid_spec=pltpu.PrefetchScalarGridSpec(
            num_scalar_prefetch=0,
            grid=(n, hw // thw),
            in_specs=[pl.BlockSpec((1, thw, c), lambda i, j: (i, j, 0)),
                      pl.BlockSpec((1, 1, c), lambda i, j: (i, 0, 0)),
                      pl.BlockSpec((1, thw, c), lambda i, j: (i, j, 0))],
            out_specs=pl.BlockSpec((1, thw, c), lambda i, j: (i, j, 0)),
        ),
        compiler_params=pltpu.CompilerParams(
            dimension_semantics=("parallel", "parallel"),
            vmem_limit_bytes=_VMEM_LIMIT),
    )(x3, g3, r3)
    return out.reshape(n, h, w, c)


# ------------------------------------------------------------- head (tiny) ---
def _head_kernel(p_ref, w_ref, b_ref, o_ref):
    o_ref[...] = jnp.dot(p_ref[...], w_ref[...],
                         preferred_element_type=jnp.float32) + b_ref[...]


@jax.jit
def head_fc(pooled, w, b):  # [N, 2048] @ [2048, 3] + b
    n = pooled.shape[0]
    return pl.pallas_call(
        _head_kernel,
        out_shape=jax.ShapeDtypeStruct((n, w.shape[1]), jnp.float32),
    )(pooled, w, b)


# ------------------------------------------------------------------ stem -----
@jax.jit
def stem_conv_bn_relu(x, w, scale, bias):
    """7x7 stride-2 pad-3 conv on the 3-channel input + folded BN + ReLU.

    TODO(synk): the stem keeps a small im2col (49*3 = 147 columns) so the
    matmul gets a dense, MXU-friendly K; every other conv reads activations
    directly (no im2col).
    """
    n, h, ww, cin = x.shape
    k, stride, pad = 7, 2, 3
    ho = (h + 2 * pad - k) // stride + 1
    wo = (ww + 2 * pad - k) // stride + 1
    xp = jnp.pad(x, ((0, 0), (pad, pad), (pad, pad), (0, 0)))
    cols = []
    for i in range(k):
        for j in range(k):
            cols.append(xp[:, i:i + stride * (ho - 1) + 1:stride,
                           j:j + stride * (wo - 1) + 1:stride, :])
    patches = jnp.stack(cols, axis=3)                  # [N, Ho, Wo, 49, 3]
    a = patches.reshape(n * ho * wo, k * k * cin)
    y = matmul_affine(a, w, scale, bias, act="relu")
    return y.reshape(n, ho, wo, w.shape[1])


# ----------------------------------------------------------------- parameters --
class _KeyGen:
    def __init__(self, key, n=4096):
        self._keys = jax.random.split(key, n)
        self._i = 0

    def __call__(self):
        k = self._keys[self._i]
        self._i += 1
        return k


def _bn_params(kg, c):  # eval-mode BN folded to per-channel scale / bias
    gamma = 1.0 + 0.05 * jax.random.normal(kg(), (c,), jnp.float32)
    beta = 0.05 * jax.random.normal(kg(), (c,), jnp.float32)
    mean = 0.05 * jax.random.normal(kg(), (c,), jnp.float32)
    var = 1.0 + 0.05 * jax.random.uniform(kg(), (c,), jnp.float32)
    scale = gamma / jnp.sqrt(var + BN_EPS)
    bias = beta - mean * scale
    return scale.reshape(1, c), bias.reshape(1, c)


def _conv1x1_weight(kg, cin, cout):
    w = jax.random.normal(kg(), (cin, cout), jnp.float32) * (2.0 / cin) ** 0.5
    return w.astype(jnp.bfloat16)


def _stem_weight(kg):
    fan_in = 3 * 49
    w = jax.random.normal(kg(), (7, 7, 3, 64), jnp.float32)
    w = w * (2.0 / fan_in) ** 0.5
    return w.reshape(147, 64).astype(jnp.bfloat16)     # (kh, kw, cin) -> K


def _grouped_diag_weight(kg, width):
    """Grouped (32) 3x3 weights stored as only the 128x128 diagonal tiles.

    Returns [9, width//128, 128(cin-within-tile), 128(cout-within-tile)];
    semantically identical to a groups=32 conv (off-group entries are zero).
    """
    c_g = width // GROUPS          # channels per group (in == out)
    gpt = 128 // c_g               # groups per 128-channel tile
    ntile = width // 128
    fan_in = c_g * 9
    w = jax.random.normal(kg(), (9, ntile, gpt, c_g, c_g), jnp.float32)
    w = w * (2.0 / fan_in) ** 0.5                       # w[t, j, g, cin, cout]
    eye = jnp.eye(gpt, dtype=jnp.float32)
    tiles = w[:, :, :, :, None, :] * eye[None, None, :, None, :, None]
    tiles = tiles.reshape(9, ntile, 128, 128)
    return tiles.astype(jnp.bfloat16)


def _se_params(kg, c):
    cr = c // REDUCTION
    w1 = jax.random.normal(kg(), (c, cr), jnp.float32) * (1.0 / c) ** 0.5
    b1 = 0.05 * jax.random.normal(kg(), (1, cr), jnp.float32)
    w2 = jax.random.normal(kg(), (cr, c), jnp.float32) * (1.0 / cr) ** 0.5
    b2 = 0.05 * jax.random.normal(kg(), (1, c), jnp.float32)
    return w1, b1, w2, b2


def init_params(key):
    kg = _KeyGen(key)
    params = {"stem": {"w": _stem_weight(kg), "bn": _bn_params(kg, 64)}}
    stages = []
    inplanes = 64
    for planes, n_blocks, _ in STAGE_CFG:
        width = (planes * 4 // 64) * GROUPS
        out_c = planes * 4
        blocks = []
        for bi in range(n_blocks):
            w1, b1, w2, b2 = _se_params(kg, out_c)
            blk = {
                "conv1_w": _conv1x1_weight(kg, inplanes, width),
                "bn1": _bn_params(kg, width),
                "conv2_w": _grouped_diag_weight(kg, width),
                "bn2": _bn_params(kg, width),
                "conv3_w": _conv1x1_weight(kg, width, out_c),
                "bn3": _bn_params(kg, out_c),
                "se_w1": w1, "se_b1": b1, "se_w2": w2, "se_b2": b2,
            }
            if bi == 0:  # 1x1 downsample conv + BN on the first block of stage
                blk["down_w"] = _conv1x1_weight(kg, inplanes, out_c)
                blk["down_bn"] = _bn_params(kg, out_c)
            blocks.append(blk)
            inplanes = out_c
        stages.append(blocks)
    params["stages"] = stages
    params["head"] = {
        "w": jax.random.normal(kg(), (2048, 3), jnp.float32) * (1.0 / 2048) ** 0.5,
        "b": 0.05 * jax.random.normal(kg(), (1, 3), jnp.float32),
    }
    return params


# -------------------------------------------------------------------- forward --
def _bottleneck(x, blk, stride):
    out = conv1x1_bn_act(x, blk["conv1_w"], *blk["bn1"], act="relu")
    out = conv3x3_grouped_bn_relu(out, blk["conv2_w"], *blk["bn2"],
                                  stride=stride)
    out = conv1x1_bn_act(out, blk["conv3_w"], *blk["bn3"], act="none")
    if "down_w" in blk:
        res = conv1x1_bn_act(x, blk["down_w"], *blk["down_bn"], act="none",
                             stride=stride)
    else:
        res = x
    pooled = global_avg_pool(out)                               # [N, C] f32
    gate = se_gate(pooled, blk["se_w1"], blk["se_b1"],
                   blk["se_w2"], blk["se_b2"])                  # [N, C]
    return se_res_relu(out, gate, res)                          # relu(x*g + res)


def forward(params, x_nchw):
    """se_resnext101_32x4d_256 forward: NCHW float32 -> [N, 3] logits."""
    x = jnp.transpose(x_nchw, (0, 2, 3, 1)).astype(jnp.bfloat16)   # -> NHWC
    # layer0: conv7x7/2 + BN + ReLU + maxpool3x3/2 (ceil_mode=True)
    x = stem_conv_bn_relu(x, params["stem"]["w"], *params["stem"]["bn"])
    x = maxpool_3x3_s2_ceil(x)
    # layer1..layer4
    for (planes, n_blocks, first_stride), blocks in zip(STAGE_CFG,
                                                        params["stages"]):
        for bi, blk in enumerate(blocks):
            x = _bottleneck(x, blk, first_stride if bi == 0 else 1)
    # head: AdaptiveAvgPool2d((1,1)) + flatten + Linear(2048, 3)
    pooled = global_avg_pool(x)                                 # [N, 2048] f32
    logits = head_fc(pooled, params["head"]["w"], params["head"]["b"])
    # TODO(synk): dropout_p is None in se_resnext101_32x4d, so no dropout here.
    return logits


if __name__ == "__main__":
    key = jax.random.PRNGKey(0)
    pkey, xkey = jax.random.split(key)
    params = init_params(pkey)
    x = jax.random.normal(xkey, (2, 3, 32, 32), jnp.float32)   # NCHW like PyTorch
    out = forward(params, x)
    out = jax.block_until_ready(out)
    assert out.shape == (2, 3) and out.dtype == jnp.float32
    print("KERNEL_OK")
</pallas_src>

<mosaic_0001>
module attributes {stable_mosaic.version = 11 : i64} {
  func.func @_mm_affine_kernel(%arg0: i32, %arg1: i32, %arg2: i32, %arg3: memref<256x147xbf16, #tpu.memory_space<vmem>>, %arg4: memref<147x64xbf16, #tpu.memory_space<vmem>>, %arg5: memref<1x64xf32, #tpu.memory_space<vmem>>, %arg6: memref<1x64xf32, #tpu.memory_space<vmem>>, %arg7: memref<256x64xbf16, #tpu.memory_space<vmem>>, %arg8: memref<256x64xf32, #tpu.memory_space<vmem>>) attributes {dimension_semantics = [#tpu.dimension_semantics<parallel>, #tpu.dimension_semantics<parallel>, #tpu.dimension_semantics<arbitrary>], iteration_bounds = array<i64: 2, 1, 1>, scalar_prefetch = 0 : i64, scratch_operands = 1 : i64, tpu.core_type = #tpu.core_type<tc>, window_params = [{transform_indices = @transform_0, window_bounds = array<i64: 256, 147>}, {transform_indices = @transform_1, window_bounds = array<i64: 147, 64>}, {transform_indices = @transform_2, window_bounds = array<i64: 1, 64>}, {transform_indices = @transform_3, window_bounds = array<i64: 1, 64>}, {transform_indices = @transform_4, window_bounds = array<i64: 256, 64>}]} {
    %c0_i32 = arith.constant 0 : i32
    %0 = arith.cmpi eq, %arg2, %c0_i32 : i32
    %1 = arith.extui %0 : i1 to i32
    %c0_i32_0 = arith.constant 0 : i32
    %2 = arith.cmpi ne, %1, %c0_i32_0 : i32
    scf.if %2 {
      %cst_10 = arith.constant 0.000000e+00 : f32
      %12 = vector.broadcast %cst_10 : f32 to vector<256x64xf32>
      %c0_11 = arith.constant 0 : index
      %c0_12 = arith.constant 0 : index
      %13 = vector.load %arg8[%c0_11, %c0_12] : memref<256x64xf32, #tpu.memory_space<vmem>>, vector<256x64xf32>
      tpu.vector_store %arg8[%c0_11, %c0_12], %12 {strides = array<i32>} : memref<256x64xf32, #tpu.memory_space<vmem>>, vector<256x64xf32>,
    } else {
    }
    %c0 = arith.constant 0 : index
    %c0_1 = arith.constant 0 : index
    %3 = vector.load %arg8[%c0, %c0_1] : memref<256x64xf32, #tpu.memory_space<vmem>>, vector<256x64xf32>
    %c0_2 = arith.constant 0 : index
    %c0_3 = arith.constant 0 : index
    %4 = vector.load %arg3[%c0_2, %c0_3] : memref<256x147xbf16, #tpu.memory_space<vmem>>, vector<256x147xbf16>
    %c0_4 = arith.constant 0 : index
    %c0_5 = arith.constant 0 : index
    %5 = vector.load %arg4[%c0_4, %c0_5] : memref<147x64xbf16, #tpu.memory_space<vmem>>, vector<147x64xbf16>
    %cst = arith.constant dense<0.000000e+00> : vector<256x64xf32>
    %6 = tpu.matmul %4, %5, %cst {dimension_numbers = #tpu.dot_dimension_numbers<[1], [0], [0], [1], [0, 0, 1, 1], [], []>} : vector<256x147xbf16>, vector<147x64xbf16>, vector<256x64xf32> -> vector<256x64xf32>
    %7 = arith.addf %3, %6 : vector<256x64xf32>
    %c0_6 = arith.constant 0 : index
    %c0_7 = arith.constant 0 : index
    %8 = vector.load %arg8[%c0_6, %c0_7] : memref<256x64xf32, #tpu.memory_space<vmem>>, vector<256x64xf32>
    tpu.vector_store %arg8[%c0_6, %c0_7], %7 {strides = array<i32>} : memref<256x64xf32, #tpu.memory_space<vmem>>, vector<256x64xf32>,
    %c0_i32_8 = arith.constant 0 : i32
    %9 = arith.cmpi eq, %arg2, %c0_i32_8 : i32
    %10 = arith.extui %9 : i1 to i32
    %c0_i32_9 = arith.constant 0 : i32
    %11 = arith.cmpi ne, %10, %c0_i32_9 : i32
    scf.if %11 {
      %c0_10 = arith.constant 0 : index
      %c0_11 = arith.constant 0 : index
      %12 = vector.load %arg8[%c0_10, %c0_11] : memref<256x64xf32, #tpu.memory_space<vmem>>, vector<256x64xf32>
      %c0_12 = arith.constant 0 : index
      %c0_13 = arith.constant 0 : index
      %13 = vector.load %arg5[%c0_12, %c0_13] : memref<1x64xf32, #tpu.memory_space<vmem>>, vector<1x64xf32>
      %14 = vector.broadcast %13 : vector<1x64xf32> to vector<256x64xf32>
      %15 = arith.mulf %12, %14 : vector<256x64xf32>
      %c0_14 = arith.constant 0 : index
      %c0_15 = arith.constant 0 : index
      %16 = vector.load %arg6[%c0_14, %c0_15] : memref<1x64xf32, #tpu.memory_space<vmem>>, vector<1x64xf32>
      %17 = vector.broadcast %16 : vector<1x64xf32> to vector<256x64xf32>
      %18 = arith.addf %15, %17 : vector<256x64xf32>
      %cst_16 = arith.constant 0.000000e+00 : f32
      %19 = vector.broadcast %cst_16 : f32 to vector<256x64xf32>
      %20 = arith.maximumf %18, %19 : vector<256x64xf32>
      %21 = arith.truncf %20 : vector<256x64xf32> to vector<256x64xbf16>
      %c0_17 = arith.constant 0 : index
      %c0_18 = arith.constant 0 : index
      %22 = vector.load %arg7[%c0_17, %c0_18] : memref<256x64xbf16, #tpu.memory_space<vmem>>, vector<256x64xbf16>
      tpu.vector_store %arg7[%c0_17, %c0_18], %21 {strides = array<i32>} : memref<256x64xbf16, #tpu.memory_space<vmem>>, vector<256x64xbf16>,
    } else {
    }
    return
  }
  func.func @transform_0(%arg0: i32, %arg1: i32, %arg2: i32) -> (i32, i32) {
    %c0_i32 = arith.constant 0 : i32
    return %arg0, %arg2 : i32, i32
  }
  func.func @transform_1(%arg0: i32, %arg1: i32, %arg2: i32) -> (i32, i32) {
    %c0_i32 = arith.constant 0 : i32
    return %arg2, %arg1 : i32, i32
  }
  func.func @transform_2(%arg0: i32, %arg1: i32, %arg2: i32) -> (i32, i32) {
    %c0_i32 = arith.constant 0 : i32
    %c0_i32_0 = arith.constant 0 : i32
    return %c0_i32, %arg1 : i32, i32
  }
  func.func @transform_3(%arg0: i32, %arg1: i32, %arg2: i32) -> (i32, i32) {
    %c0_i32 = arith.constant 0 : i32
    %c0_i32_0 = arith.constant 0 : i32
    return %c0_i32, %arg1 : i32, i32
  }
  func.func @transform_4(%arg0: i32, %arg1: i32, %arg2: i32) -> (i32, i32) {
    %c0_i32 = arith.constant 0 : i32
    return %arg0, %arg1 : i32, i32
  }
}

</mosaic_0001>

<bundles_post_ra>
// kernel: matmul_affine.1
= control target key start
LH: loop header
LB: loop body
LE: loop exit
PB: predicated region body
PF: predicated region fallthrough
CT: control target
= control target key end

     0   :  { %s1585_s15 = smov 0   ;;  %s1587_s16 = smov 0   ;;  %s1953_s0 = inlined_call_operand.vmem [shape: bf16[512,147], index: 0, kind: input, shape index: {}]   ;;  %s1954_s1 = inlined_call_operand.vmem [shape: bf16[147,64], index: 1, kind: input, shape index: {}]   ;;  %s1955_s2 = inlined_call_operand.vmem [shape: f32[1,64], index: 2, kind: input, shape index: {}]   ;;  %s1956_s3 = inlined_call_operand.vmem [shape: f32[1,64], index: 3, kind: input, shape index: {}]   ;;  %s1957_s4 = inlined_call_operand.vmem [shape: bf16[512,64], index: 4, kind: output, shape index: {}]  }
   0x1   :  { %s1589_s17 = smov 0  }
   0x2 LB: > { %s33_s18 = sadd.s32 1, %s1552_s16  ;;  %p1266_p0 = scmp.ge.s32.totalorder %s1556_s17, 1  ;;  %s1556_s17 = sphi %s1589_s17, %s14_s17   ;;  %s1552_s16 = sphi %s1587_s16, %s1959_s16   ;;  %s1548_s15 = sphi %s1585_s15, %s1958_s15  }
   0x3   : > { %p35_p1 = scmp.ge.s32.totalorder %s33_s18, 2  ;;  %p224_p2 = scmp.lt.s32.totalorder %s1556_s17, 3 }
   0x5   : > { %s1961_s18 = smov (%p35_p1, %s33_s18), 0  ;;  %p225_p3 = pnand %p1266_p0, %p224_p2 }
   0x6   : > { %s1267_s23 = sshll.u32 (!%p225_p3), %s1548_s15, 5 }
   0x7   : > { %228 = sbr.rel (%p225_p3) target bundleno = 318 (0x13e), region = 36  ;;  %p274_p4 = scmp.lt.s32.totalorder (!%p225_p3), %s1267_s23, 63 }
   0xc   : > { %v1494_v0 = vld [vmem:[%s1954_s1 + $0x38] sm:$0xff]  ;;  %v428_v1 = vld [vmem:[%s1954_s1 + $0x48] sm:$0x3]  ;;  %vm679_vm0 = vcmask 1040384   ;;  %vm680_vm1 = vcmask 1041408   ;;  %v1493_v3 = vld [vmem:[%s1954_s1 + $0x30] sm:$0xff] }
   0xd   : > { %v610_v2 = vunpack.c.l.b16 %v428_v1  ;;  %686 = vmatpush.bf16.msra.mxu0 %v1494_v0  ;;  %1496 = vmatpush.bf16.msra.mxu2 %v1494_v0  ;;  %v1558_v4 = vmov 65535   ;;  %s1963_s23 = smov (!%p274_p4, %s1267_s23), 63  ;;  %v1492_v9 = vld [vmem:[%s1954_s1 + $0x28] sm:$0xff]  ;;  %v1495_v10 = vld [vmem:[%s1954_s1 + $0x40] sm:$0xff]  ;;  %vm630_vm2 = vcmask 154624   ;;  %v1490_v18 = vld [vmem:[%s1954_s1 + $0x18] sm:$0xff] }
   0xe   : > { %v681_v5 = vsel %vm679_vm0, 4294967295, %v1558_v4  ;;  %s1454_s28 = sshll.u32 %s1963_s23, 3  ;;  %v1491_v14 = vld [vmem:[%s1954_s1 + $0x20] sm:$0xff]  ;;  %v1489_v19 = vld [vmem:[%s1954_s1 + $0x10] sm:$0xff]  ;;  %v1488_v20 = vld [vmem:[%s1954_s1 + $0x8] sm:$0xff]  ;;  %vm313_vm3 = vcmask 523264  }
   0xf   : > { %v620_v6 = vpack.c.b16 %v610_v2, %v610_v2  ;;  %v682_v7 = vsel %vm680_vm1, %v681_v5, 0  ;;  %s1624_s7 = scalar_lea.vmem %s1953_s0, %s1454_s28  ;;  %v1487_v26 = vld [vmem:[%s1954_s1] sm:$0xff]  ;;  %s1271_s26 = sshll.u32 %s1963_s23, 2  ;;  %vm1100_vm4 = vcmask 519168  }
  0x10   : > { %v1455_v11 = vld [vmem:[%s1624_s7 + $0x4] sm:$0xf]  ;;  %v1276_v12 = vld [vmem:[%s1624_s7 + $0x8] sm:$0xf0]  ;;  %v1473_v15 = vld [vmem:[%s1624_s7 + $0x94] sm:$0xf]  ;;  %s1775_s29 = scalar_lea.vmem %s1957_s4, %s1271_s26 }
  0x11   : > { %v684_v8 = vand.u32 %v682_v7, %v620_v6  ;;  %687 = vmatpush.bf16.msra.mxu0 %v1493_v3  ;;  %1497 = vmatpush.bf16.msra.mxu2 %v1493_v3  ;;  %v1279_v13 = vor.u32 %v1455_v11, %v1276_v12  ;;  %v1348_v16 = vld [vmem:[%s1624_s7 + $0x98] sm:$0xf0]  ;;  %v1457_v21 = vld [vmem:[%s1624_s7 + $0x14] sm:$0xf]  ;;  %v1475_v23 = vld [vmem:[%s1624_s7 + $0xa4] sm:$0xf] }
  0x12   : > { %v1351_v17 = vor.u32 %v1473_v15, %v1348_v16  ;;  %v1284_v22 = vld [vmem:[%s1624_s7 + $0x18] sm:$0xf0]  ;;  %v1356_v24 = vld [vmem:[%s1624_s7 + $0xa8] sm:$0xf0]  ;;  %v1274_v27 = vld [vmem:[%s1624_s7] sm:$0xf] }
  0x13   : > { %781 = vmatpush.bf16.msra.mxu1 %v684_v8  ;;  %1504 = vmatpush.bf16.msra.mxu3 %v684_v8  ;;  %v1287_v25 = vor.u32 %v1457_v21, %v1284_v22  ;;  %v1456_v28 = vld [vmem:[%s1624_s7 + $0x4] sm:$0xf0]  ;;  %v1338_v29 = vld [vmem:[%s1624_s7 + $0x80] sm:$0xf]  ;;  %v1359_v31 = vor.u32 %v1475_v23, %v1356_v24  ;;  %v1459_v34 = vld [vmem:[%s1624_s7 + $0x24] sm:$0xf] }
  0x14   : > { %v1472_v30 = vld [vmem:[%s1624_s7 + $0x84] sm:$0xf0]  ;;  %v1275_v32 = vor.u32 %v1456_v28, %v1274_v27  ;;  %v1292_v35 = vld [vmem:[%s1624_s7 + $0x28] sm:$0xf0]  ;;  %v1477_v36 = vld [vmem:[%s1624_s7 + $0xb4] sm:$0xf] }
  0x15   : > { %688 = vmatpush.bf16.msra.mxu0 %v1492_v9  ;;  %1498 = vmatpush.bf16.msra.mxu2 %v1492_v9  ;;  %v1339_v33 = vor.u32 %v1472_v30, %v1338_v29  ;;  %v1364_v37 = vld [vmem:[%s1624_s7 + $0xb8] sm:$0xf0]  ;;  %v1295_v38 = vor.u32 %v1459_v34, %v1292_v35  ;;  %v1282_v39 = vld [vmem:[%s1624_s7 + $0x10] sm:$0xf]  ;;  %v1458_v40 = vld [vmem:[%s1624_s7 + $0x14] sm:$0xf0] }
  0x16   : > { %v1346_v41 = vld [vmem:[%s1624_s7 + $0x90] sm:$0xf]  ;;  %v1474_v42 = vld [vmem:[%s1624_s7 + $0x94] sm:$0xf0]  ;;  %v1367_v43 = vor.u32 %v1477_v36, %v1364_v37  ;;  %v1283_v44 = vor.u32 %v1458_v40, %v1282_v39  ;;  %v1461_v46 = vld [vmem:[%s1624_s7 + $0x34] sm:$0xf] }
  0x17   : > { %782 = vmatpush.bf16.msra.mxu1 %v1495_v10  ;;  %1505 = vmatpush.bf16.msra.mxu3 %v1495_v10  ;;  %v1347_v45 = vor.u32 %v1474_v42, %v1346_v41  ;;  %v1300_v47 = vld [vmem:[%s1624_s7 + $0x38] sm:$0xf0]  ;;  %v1479_v48 = vld [vmem:[%s1624_s7 + $0xc4] sm:$0xf]  ;;  %v1372_v49 = vld [vmem:[%s1624_s7 + $0xc8] sm:$0xf0] }
  0x18   : > { %v1303_v50 = vor.u32 %v1461_v46, %v1300_v47  ;;  %v1290_v51 = vld [vmem:[%s1624_s7 + $0x20] sm:$0xf]  ;;  %v1460_v52 = vld [vmem:[%s1624_s7 + $0x24] sm:$0xf0]  ;;  %v1375_v55 = vor.u32 %v1479_v48, %v1372_v49  ;;  %v1463_v58 = vld [vmem:[%s1624_s7 + $0x44] sm:$0xf] }
  0x19   : > { %689 = vmatpush.bf16.msra.mxu0 %v1491_v14  ;;  %1499 = vmatpush.bf16.msra.mxu2 %v1491_v14  ;;  %v1354_v53 = vld [vmem:[%s1624_s7 + $0xa0] sm:$0xf]  ;;  %v1476_v54 = vld [vmem:[%s1624_s7 + $0xa4] sm:$0xf0]  ;;  %v1291_v56 = vor.u32 %v1460_v52, %v1290_v51  ;;  %v1308_v59 = vld [vmem:[%s1624_s7 + $0x48] sm:$0xf0] }
  0x1a   : > { %1436 = vmatmul.msk.bf16.vlgmr.msra.gmra.mxu1 %vm630_vm2, %v1279_v13  ;;  %1445 = vmatmul.msk.bf16.vlgmr.msra.gmra.mxu3 %vm630_vm2, %v1351_v17  ;;  %v1355_v57 = vor.u32 %v1476_v54, %v1354_v53  ;;  %v1481_v60 = vld [vmem:[%s1624_s7 + $0xd4] sm:$0xf]  ;;  %v1380_v61 = vld [vmem:[%s1624_s7 + $0xd8] sm:$0xf0]  ;;  %v1311_v62 = vor.u32 %v1463_v58, %v1308_v59  ;;  %v1298_v63 = vld [vmem:[%s1624_s7 + $0x30] sm:$0xf] }
  0x1b   : > { %v1462_v0 = vld [vmem:[%s1624_s7 + $0x34] sm:$0xf0]  ;;  %v1362_v1 = vld [vmem:[%s1624_s7 + $0xb0] sm:$0xf]  ;;  %v1383_v3 = vor.u32 %v1481_v60, %v1380_v61  ;;  %v1465_v6 = vld [vmem:[%s1624_s7 + $0x54] sm:$0xf] }
  0x1c   : > { %v1478_v2 = vld [vmem:[%s1624_s7 + $0xb4] sm:$0xf0]  ;;  %v1299_v4 = vor.u32 %v1462_v0, %v1298_v63  ;;  %v1316_v7 = vld [vmem:[%s1624_s7 + $0x58] sm:$0xf0]  ;;  %v1483_v8 = vld [vmem:[%s1624_s7 + $0xe4] sm:$0xf] }
  0x1d   : > { %690 = vmatpush.bf16.msra.mxu0 %v1490_v18  ;;  %1500 = vmatpush.bf16.msra.mxu2 %v1490_v18  ;;  %v1363_v5 = vor.u32 %v1478_v2, %v1362_v1  ;;  %v1388_v9 = vld [vmem:[%s1624_s7 + $0xe8] sm:$0xf0]  ;;  %v1319_v10 = vor.u32 %v1465_v6, %v1316_v7  ;;  %v1306_v11 = vld [vmem:[%s1624_s7 + $0x40] sm:$0xf]  ;;  %v1464_v12 = vld [vmem:[%s1624_s7 + $0x44] sm:$0xf0] }
  0x1e   : > { %v1370_v13 = vld [vmem:[%s1624_s7 + $0xc0] sm:$0xf]  ;;  %v1480_v14 = vld [vmem:[%s1624_s7 + $0xc4] sm:$0xf0]  ;;  %v1391_v15 = vor.u32 %v1483_v8, %v1388_v9  ;;  %v1307_v16 = vor.u32 %v1464_v12, %v1306_v11  ;;  %v1467_v18 = vld [vmem:[%s1624_s7 + $0x64] sm:$0xf] }
  0x1f   : > { %v1371_v17 = vor.u32 %v1480_v14, %v1370_v13  ;;  %v1396_v21 = vld [vmem:[%s1624_s7 + $0xf8] sm:$0xf0]  ;;  %v1314_v23 = vld [vmem:[%s1624_s7 + $0x50] sm:$0xf]  ;;  %v1466_v24 = vld [vmem:[%s1624_s7 + $0x54] sm:$0xf0] }
  0x20   : > { %v1315_v28 = vor.u32 %v1466_v24, %v1314_v23  ;;  %v1469_v30 = vld [vmem:[%s1624_s7 + $0x74] sm:$0xf]  ;;  %v1468_v34 = vld [vmem:[%s1624_s7 + $0x64] sm:$0xf0]  ;;  %v1559_v35 = vmov 0.0  }
  0x21   : > { %691 = vmatpush.bf16.msra.mxu0 %v1489_v19  ;;  %1501 = vmatpush.bf16.msra.mxu2 %v1489_v19  ;;  %v1324_v19 = vld [vmem:[%s1624_s7 + $0x68] sm:$0xf0]  ;;  %314 = vst.msk [vmem:[#allocation2] sm:$0xff] %vm313_vm3, %v1559_v35  ;;  %v1386_v36 = vld [vmem:[%s1624_s7 + $0xe0] sm:$0xf] }
  0x22   : > { %v1327_v22 = vor.u32 %v1467_v18, %v1324_v19  ;;  %v1484_v37 = vld [vmem:[%s1624_s7 + $0xe4] sm:$0xf0]  ;;  %315 = vst.msk [vmem:[#allocation2 + $0x8] sm:$0xff] %vm313_vm3, %v1559_v35  ;;  %v1471_v40 = vld [vmem:[%s1624_s7 + $0x84] sm:$0xf] }
  0x23   : > { %316 = vst.msk [vmem:[#allocation2 + $0x10] sm:$0xff] %vm313_vm3, %v1559_v35  ;;  %v1387_v39 = vor.u32 %v1484_v37, %v1386_v36  ;;  %v1340_v41 = vld [vmem:[%s1624_s7 + $0x88] sm:$0xf0]  ;;  %v1394_v46 = vld [vmem:[%s1624_s7 + $0xf0] sm:$0xf] }
  0x24   : > { %317 = vst.msk [vmem:[#allocation2 + $0x18] sm:$0xff] %vm313_vm3, %v1559_v35  ;;  %v1343_v42 = vor.u32 %v1471_v40, %v1340_v41  ;;  %v1486_v47 = vld [vmem:[%s1624_s7 + $0xf4] sm:$0xf0]  ;;  %v1764_v0 = vld [vmem:[%s1956_s3] ss:$0 sm:$0xff] }
  0x25   : > { %692 = vmatpush.bf16.msra.mxu0 %v1488_v20  ;;  %1502 = vmatpush.bf16.msra.mxu2 %v1488_v20  ;;  %v1485_v20 = vld [vmem:[%s1624_s7 + $0xf4] sm:$0xf]  ;;  %318 = vst.msk [vmem:[#allocation2 + $0x20] sm:$0xff] %vm313_vm3, %v1559_v35  ;;  %v1395_v49 = vor.u32 %v1486_v47, %v1394_v46 }
  0x26   : > { %v1399_v27 = vor.u32 %v1485_v20, %v1396_v21  ;;  %319 = vst.msk [vmem:[#allocation2 + $0x28] sm:$0xff] %vm313_vm3, %v1559_v35 }
  0x27   : > { %320 = vst.msk [vmem:[#allocation2 + $0x30] sm:$0xff] %vm313_vm3, %v1559_v35 }
  0x28   : > { %321 = vst.msk [vmem:[#allocation2 + $0x38] sm:$0xff] %vm313_vm3, %v1559_v35  ;;  %v346_v53 = vld [vmem:[#allocation2] sm:$0xff] }
  0x29   : > { %693 = vmatpush.bf16.msra.mxu0 %v1487_v26  ;;  %1503 = vmatpush.bf16.msra.mxu2 %v1487_v26  ;;  %v1482_v26 = vld [vmem:[%s1624_s7 + $0xd4] sm:$0xf0]  ;;  %322 = vst.msk [vmem:[#allocation2 + $0x40] sm:$0xff] %vm313_vm3, %v1559_v35  ;;  %v347_v60 = vld [vmem:[#allocation2 + $0x8] sm:$0xff] }
  0x2a   : > { %1437 = vmatmul.msk.bf16.gmra.mxu1 %vm630_vm2, %v1287_v25  ;;  %1446 = vmatmul.msk.bf16.gmra.mxu3 %vm630_vm2, %v1359_v31  ;;  %v1378_v25 = vld [vmem:[%s1624_s7 + $0xd0] sm:$0xf]  ;;  %v1332_v31 = vld [vmem:[%s1624_s7 + $0x78] sm:$0xf0]  ;;  %323 = vst.msk [vmem:[#allocation2 + $0x48] sm:$0xff] %vm313_vm3, %v1559_v35 }
  0x2b   : > { %v1379_v29 = vor.u32 %v1482_v26, %v1378_v25  ;;  %324 = vst.msk [vmem:[#allocation2 + $0x50] sm:$0xff] %vm313_vm3, %v1559_v35  ;;  %v348_v7 = vld [vmem:[#allocation2 + $0x10] sm:$0xff]  ;;  %v349_v21 = vld [vmem:[#allocation2 + $0x18] sm:$0xff] }
  0x2c   : > { %694 = vmatmul.bf16.vlgmr.msra.gmra.mxu0 %v1275_v32  ;;  %734 = vmatmul.bf16.vlgmr.msra.gmra.mxu2 %v1339_v33  ;;  %v1335_v32 = vor.u32 %v1469_v30, %v1332_v31  ;;  %v1322_v33 = vld [vmem:[%s1624_s7 + $0x60] sm:$0xf]  ;;  %325 = vst.msk [vmem:[#allocation2 + $0x58] sm:$0xff] %vm313_vm3, %v1559_v35 }
  0x2d   : > { %326 = vst.msk [vmem:[#allocation2 + $0x60] sm:$0xff] %vm313_vm3, %v1559_v35  ;;  %v350_v36 = vld [vmem:[#allocation2 + $0x20] sm:$0xff] }
  0x2e   : > { %327 = vst.msk [vmem:[#allocation2 + $0x68] sm:$0xff] %vm313_vm3, %v1559_v35 }
  0x2f   : > { %328 = vst.msk [vmem:[#allocation2 + $0x70] sm:$0xff] %vm313_vm3, %v1559_v35 }
  0x30   : > { %329 = vst.msk [vmem:[#allocation2 + $0x78] sm:$0xff] %vm313_vm3, %v1559_v35 }
  0x31   : > { %330 = vst.msk [vmem:[#allocation2 + $0x80] sm:$0xff] %vm313_vm3, %v1559_v35 }
  0x32   : > { %331 = vst.msk [vmem:[#allocation2 + $0x88] sm:$0xff] %vm313_vm3, %v1559_v35 }
  0x33   : > { %332 = vst.msk [vmem:[#allocation2 + $0x90] sm:$0xff] %vm313_vm3, %v1559_v35 }
  0x34   : > { %333 = vst.msk [vmem:[#allocation2 + $0x98] sm:$0xff] %vm313_vm3, %v1559_v35 }
  0x35   : > { %334 = vst.msk [vmem:[#allocation2 + $0xa0] sm:$0xff] %vm313_vm3, %v1559_v35 }
  0x36   : > { %335 = vst.msk [vmem:[#allocation2 + $0xa8] sm:$0xff] %vm313_vm3, %v1559_v35 }
  0x37   : > { %336 = vst.msk [vmem:[#allocation2 + $0xb0] sm:$0xff] %vm313_vm3, %v1559_v35 }
  0x38   : > { %337 = vst.msk [vmem:[#allocation2 + $0xb8] sm:$0xff] %vm313_vm3, %v1559_v35 }
  0x39   : > { %338 = vst.msk [vmem:[#allocation2 + $0xc0] sm:$0xff] %vm313_vm3, %v1559_v35 }
  0x3a   : > { %1438 = vmatmul.msk.bf16.gmra.mxu1 %vm630_vm2, %v1295_v38  ;;  %1447 = vmatmul.msk.bf16.gmra.mxu3 %vm630_vm2, %v1367_v43  ;;  %v1323_v38 = vor.u32 %v1468_v34, %v1322_v33  ;;  %v1330_v43 = vld [vmem:[%s1624_s7 + $0x70] sm:$0xf]  ;;  %339 = vst.msk [vmem:[#allocation2 + $0xc8] sm:$0xff] %vm313_vm3, %v1559_v35 }
  0x3b   : > { %340 = vst.msk [vmem:[#allocation2 + $0xd0] sm:$0xff] %vm313_vm3, %v1559_v35  ;;  %v364_v18 = vld [vmem:[#allocation2 + $0x90] sm:$0xff] }
  0x3c   : > { %699 = vmatmul.bf16.gmra.mxu0 %v1283_v44  ;;  %739 = vmatmul.bf16.gmra.mxu2 %v1347_v45  ;;  %v1470_v44 = vld [vmem:[%s1624_s7 + $0x74] sm:$0xf0]  ;;  %341 = vst.msk [vmem:[#allocation2 + $0xd8] sm:$0xff] %vm313_vm3, %v1559_v35 }
  0x3d   : > { %v1331_v48 = vor.u32 %v1470_v44, %v1330_v43  ;;  %342 = vst.msk [vmem:[#allocation2 + $0xe0] sm:$0xff] %vm313_vm3, %v1559_v35 }
  0x3e   : > { %343 = vst.msk [vmem:[#allocation2 + $0xe8] sm:$0xff] %vm313_vm3, %v1559_v35 }
  0x3f   : > { %344 = vst.msk [vmem:[#allocation2 + $0xf0] sm:$0xff] %vm313_vm3, %v1559_v35 }
  0x40   : > { %345 = vst.msk [vmem:[#allocation2 + $0xf8] sm:$0xff] %vm313_vm3, %v1559_v35 }
  0x4a   : > { %1439 = vmatmul.msk.bf16.gmra.mxu1 %vm630_vm2, %v1303_v50  ;;  %1448 = vmatmul.msk.bf16.gmra.mxu3 %vm630_vm2, %v1375_v55 }
  0x4c   : > { %704 = vmatmul.bf16.gmra.mxu0 %v1291_v56  ;;  %744 = vmatmul.bf16.gmra.mxu2 %v1355_v57 }
  0x5a   : > { %1440 = vmatmul.msk.bf16.gmra.mxu1 %vm630_vm2, %v1311_v62  ;;  %1449 = vmatmul.msk.bf16.gmra.mxu3 %vm630_vm2, %v1383_v3  ;;  %v1759_v62 = vld [vmem:[%s1955_s2] ss:$0 sm:$0xff] }
  0x5c   : > { %709 = vmatmul.bf16.gmra.mxu0 %v1299_v4  ;;  %749 = vmatmul.bf16.gmra.mxu2 %v1363_v5 }
  0x6a   : > { %1441 = vmatmul.msk.bf16.gmra.mxu1 %vm630_vm2, %v1319_v10  ;;  %1450 = vmatmul.msk.bf16.gmra.mxu3 %vm630_vm2, %v1391_v15 }
  0x6c   : > { %714 = vmatmul.bf16.gmra.mxu0 %v1307_v16  ;;  %754 = vmatmul.bf16.gmra.mxu2 %v1371_v17 }
  0x7a   : > { %1442 = vmatmul.msk.bf16.gmra.mxu1 %vm630_vm2, %v1327_v22  ;;  %1451 = vmatmul.msk.bf16.gmra.mxu3 %vm630_vm2, %v1399_v27 }
  0x7c   : > { %719 = vmatmul.bf16.gmra.mxu0 %v1315_v28  ;;  %759 = vmatmul.bf16.gmra.mxu2 %v1379_v29 }
  0x8a   : > { %1443 = vmatmul.msk.bf16.gmra.mxu1 %vm630_vm2, %v1335_v32  ;;  %v365_v32 = vld [vmem:[#allocation2 + $0x98] sm:$0xff] }
  0x8c   : > { %724 = vmatmul.bf16.gmra.mxu0 %v1323_v38  ;;  %764 = vmatmul.bf16.gmra.mxu2 %v1387_v39 }
  0x97   : > { %v784_v45 = vpop.f32.mrf.mxu1 }
  0x9a   : > { %1444 = vmatmul.msk.bf16.gmra.mxu1 %vm630_vm2, %v1343_v42 }
  0x9c   : > { %729 = vmatmul.bf16.gmra.mxu0 %v1331_v48  ;;  %769 = vmatmul.bf16.gmra.mxu2 %v1395_v49 }
  0x9d   : > { %v829_v52 = vpop.f32.mrf.mxu3 }
  0x9f   : > { %v786_v50 = vpop.f32.mrf.mxu1 }
  0xa5   : > { %v831_v59 = vpop.f32.mrf.mxu3 }
  0xa7   : > { %v789_v51 = vpop.f32.mrf.mxu1 }
  0xa9   : > { %v695_v54 = vpop.f32.mrf.mxu0 }
  0xaa   : > { %v785_v55 = vadd.f32 %v784_v45, %v695_v54 }
  0xac   : > { %v864_v56 = vadd.f32 %v785_v55, %v346_v53  ;;  %v351_v55 = vld [vmem:[#allocation2 + $0x28] sm:$0xff] }
  0xad   : > { %v834_v11 = vpop.f32.mrf.mxu3 }
  0xae   : > { %897 = vst.msk [vmem:[#allocation2] sm:$0xff] %vm313_vm3, %v864_v56 }
  0xaf   : > { %v791_v57 = vpop.f32.mrf.mxu1  ;;  %v1754_v58 = vpop.f32.mrf.mxu2 }
  0xb1   : > { %v697_v61 = vpop.f32.mrf.mxu0 }
  0xb2   : > { %v787_v63 = vadd.f32 %v786_v50, %v697_v61  ;;  %v366_v50 = vld [vmem:[#allocation2 + $0xa0] sm:$0xff] }
  0xb4   : > { %v865_v1 = vadd.f32 %v787_v63, %v347_v60 }
  0xb5   : > { %v932_v2 = vld [vmem:[#allocation2] sm:$0xff]  ;;  %v836_v28 = vpop.f32.mrf.mxu3 }
  0xb6   : > { %v968_v3 = vmul.f32 %v1759_v62, %v932_v2  ;;  %898 = vst.msk [vmem:[#allocation2 + $0x8] sm:$0xff] %vm313_vm3, %v865_v1 }
  0xb7   : > { %v794_v4 = vpop.f32.mrf.mxu1  ;;  %v1770_v6 = vpop.f32.mrf.mxu2 }
  0xb8   : > { %v1004_v5 = vadd.f32 %v1764_v0, %v968_v3 }
  0xb9   : > { %v700_v8 = vpop.f32.mrf.mxu0 }
  0xba   : > { %v1036_v9 = vmax.f32 %v1004_v5, 0.0  ;;  %v790_v10 = vadd.f32 %v789_v51, %v700_v8 }
  0xbc   : > { %v1068_v12 = vpack.c.bf16 %v1036_v9, %v1036_v9  ;;  %v866_v13 = vadd.f32 %v790_v10, %v348_v7  ;;  %v367_v10 = vld [vmem:[#allocation2 + $0xa8] sm:$0xff] }
  0xbd   : > { %v933_v14 = vld [vmem:[#allocation2 + $0x8] sm:$0xff]  ;;  %v839_v47 = vpop.f32.mrf.mxu3 }
  0xbe   : > { %1101 = vst.msk [vmem:[%s1775_s29] sm:$0xf] %vm1100_vm4, %v1068_v12  ;;  %v969_v15 = vmul.f32 %v1759_v62, %v933_v14 }
  0xbf   : > { %v796_v16 = vpop.f32.mrf.mxu1  ;;  %899 = vst.msk [vmem:[#allocation2 + $0x10] sm:$0xff] %vm313_vm3, %v866_v13  ;;  %v740_v19 = vpop.f32.mrf.mxu2 }
  0xc0   : > { %v1005_v17 = vadd.f32 %v1764_v0, %v969_v15  ;;  %v830_v20 = vadd.f32 %v829_v52, %v740_v19  ;;  %v352_v15 = vld [vmem:[#allocation2 + $0x30] sm:$0xff] }
  0xc1   : > { %v702_v22 = vpop.f32.mrf.mxu0 }
  0xc2   : > { %v1037_v23 = vmax.f32 %v1005_v17, 0.0  ;;  %v792_v24 = vadd.f32 %v791_v57, %v702_v22  ;;  %v882_v25 = vadd.f32 %v830_v20, %v364_v18 }
  0xc4   : > { %v1069_v26 = vpack.c.bf16 %v1037_v23, %v1037_v23  ;;  %v867_v27 = vadd.f32 %v792_v24, %v349_v21  ;;  %915 = vst.msk [vmem:[#allocation2 + $0x90] sm:$0xff] %vm313_vm3, %v882_v25 }
  0xc5   : > { %v841_v12 = vpop.f32.mrf.mxu3 }
  0xc6   : > { %1102 = vst.msk [vmem:[%s1775_s29 + $0x4] sm:$0xf] %vm1100_vm4, %v1069_v26  ;;  %v934_v29 = vld [vmem:[#allocation2 + $0x10] sm:$0xff] }
  0xc7   : > { %v799_v30 = vpop.f32.mrf.mxu1  ;;  %v970_v31 = vmul.f32 %v1759_v62, %v934_v29  ;;  %900 = vst.msk [vmem:[#allocation2 + $0x18] sm:$0xff] %vm313_vm3, %v867_v27  ;;  %v742_v33 = vpop.f32.mrf.mxu2  ;;  %v368_v29 = vld [vmem:[#allocation2 + $0xb0] sm:$0xff] }
  0xc8   : > { %v832_v35 = vadd.f32 %v831_v59, %v742_v33 }
  0xc9   : > { %v1006_v34 = vadd.f32 %v1764_v0, %v970_v31  ;;  %v705_v37 = vpop.f32.mrf.mxu0 }
  0xca   : > { %v795_v38 = vadd.f32 %v794_v4, %v705_v37  ;;  %v883_v40 = vadd.f32 %v832_v35, %v365_v32  ;;  %v353_v32 = vld [vmem:[#allocation2 + $0x38] sm:$0xff] }
  0xcb   : > { %v1038_v39 = vmax.f32 %v1006_v34, 0.0  ;;  %v950_v41 = vld [vmem:[#allocation2 + $0x90] sm:$0xff] }
  0xcc   : > { %v868_v42 = vadd.f32 %v795_v38, %v350_v36  ;;  %v986_v44 = vmul.f32 %v1759_v62, %v950_v41  ;;  %916 = vst.msk [vmem:[#allocation2 + $0x98] sm:$0xff] %vm313_vm3, %v883_v40 }
  0xcd   : > { %v1070_v43 = vpack.c.bf16 %v1038_v39, %v1038_v39  ;;  %v844_v37 = vpop.f32.mrf.mxu3 }
  0xce   : > { %v935_v45 = vld [vmem:[#allocation2 + $0x18] sm:$0xff]  ;;  %901 = vst.msk [vmem:[#allocation2 + $0x20] sm:$0xff] %vm313_vm3, %v868_v42  ;;  %v1022_v48 = vadd.f32 %v1764_v0, %v986_v44 }
  0xcf   : > { %v801_v46 = vpop.f32.mrf.mxu1  ;;  %1103 = vst.msk [vmem:[%s1775_s29 + $0x8] sm:$0xf] %vm1100_vm4, %v1070_v43  ;;  %v971_v49 = vmul.f32 %v1759_v62, %v935_v45  ;;  %v745_v51 = vpop.f32.mrf.mxu2 }
  0xd0   : > { %v1054_v52 = vmax.f32 %v1022_v48, 0.0  ;;  %v835_v54 = vadd.f32 %v834_v11, %v745_v51  ;;  %v369_v48 = vld [vmem:[#allocation2 + $0xb8] sm:$0xff] }
  0xd1   : > { %v1007_v53 = vadd.f32 %v1764_v0, %v971_v49  ;;  %v707_v56 = vpop.f32.mrf.mxu0 }
  0xd2   : > { %v797_v57 = vadd.f32 %v796_v16, %v707_v56  ;;  %v1086_v59 = vpack.c.bf16 %v1054_v52, %v1054_v52  ;;  %v884_v61 = vadd.f32 %v835_v54, %v366_v50  ;;  %v354_v52 = vld [vmem:[#allocation2 + $0x40] sm:$0xff] }
  0xd3   : > { %v1039_v60 = vmax.f32 %v1007_v53, 0.0  ;;  %v951_v63 = vld [vmem:[#allocation2 + $0x98] sm:$0xff] }
  0xd4   : > { %v869_v1 = vadd.f32 %v797_v57, %v351_v55  ;;  %1119 = vst.msk [vmem:[%s1775_s29 + $0x48] sm:$0xf] %vm1100_vm4, %v1086_v59  ;;  %v987_v3 = vmul.f32 %v1759_v62, %v951_v63 }
  0xd5   : > { %v1071_v2 = vpack.c.bf16 %v1039_v60, %v1039_v60  ;;  %v936_v4 = vld [vmem:[#allocation2 + $0x20] sm:$0xff]  ;;  %917 = vst.msk [vmem:[#allocation2 + $0xa0] sm:$0xff] %vm313_vm3, %v884_v61  ;;  %v846_v63 = vpop.f32.mrf.mxu3 }
  0xd6   : > { %v972_v5 = vmul.f32 %v1759_v62, %v936_v4  ;;  %v1023_v8 = vadd.f32 %v1764_v0, %v987_v3  ;;  %902 = vst.msk [vmem:[#allocation2 + $0x28] sm:$0xff] %vm313_vm3, %v869_v1 }
  0xd7   : > { %v804_v7 = vpop.f32.mrf.mxu1  ;;  %1104 = vst.msk [vmem:[%s1775_s29 + $0xc] sm:$0xf] %vm1100_vm4, %v1071_v2  ;;  %v747_v11 = vpop.f32.mrf.mxu2 }
  0xd8   : > { %v1008_v9 = vadd.f32 %v1764_v0, %v972_v5  ;;  %v1055_v13 = vmax.f32 %v1023_v8, 0.0  ;;  %v837_v14 = vadd.f32 %v836_v28, %v747_v11 }
  0xd9   : > { %v710_v16 = vpop.f32.mrf.mxu0 }
  0xda   : > { %v1040_v17 = vmax.f32 %v1008_v9, 0.0  ;;  %v800_v18 = vadd.f32 %v799_v30, %v710_v16  ;;  %v1087_v19 = vpack.c.bf16 %v1055_v13, %v1055_v13  ;;  %v885_v20 = vadd.f32 %v837_v14, %v367_v10  ;;  %v370_v9 = vld [vmem:[#allocation2 + $0xc0] sm:$0xff]  ;;  %v355_v14 = vld [vmem:[#allocation2 + $0x48] sm:$0xff] }
  0xdc   : > { %v1072_v21 = vpack.c.bf16 %v1040_v17, %v1040_v17  ;;  %v870_v22 = vadd.f32 %v800_v18, %v352_v15  ;;  %1120 = vst.msk [vmem:[%s1775_s29 + $0x4c] sm:$0xf] %vm1100_vm4, %v1087_v19  ;;  %v952_v23 = vld [vmem:[#allocation2 + $0xa0] sm:$0xff] }
  0xdd   : > { %v988_v24 = vmul.f32 %v1759_v62, %v952_v23  ;;  %v937_v26 = vld [vmem:[#allocation2 + $0x28] sm:$0xff]  ;;  %918 = vst.msk [vmem:[#allocation2 + $0xa8] sm:$0xff] %vm313_vm3, %v885_v20 }
  0xde   : > { %1105 = vst.msk [vmem:[%s1775_s29 + $0x10] sm:$0xf] %vm1100_vm4, %v1072_v21  ;;  %v973_v28 = vmul.f32 %v1759_v62, %v937_v26 }
  0xdf   : > { %v806_v25 = vpop.f32.mrf.mxu1  ;;  %v1024_v27 = vadd.f32 %v1764_v0, %v988_v24  ;;  %903 = vst.msk [vmem:[#allocation2 + $0x30] sm:$0xff] %vm313_vm3, %v870_v22  ;;  %v750_v30 = vpop.f32.mrf.mxu2 }
  0xe0   : > { %v840_v31 = vadd.f32 %v839_v47, %v750_v30  ;;  %v1009_v35 = vadd.f32 %v1764_v0, %v973_v28  ;;  %v849_v28 = vpop.f32.mrf.mxu3  ;;  %v371_v30 = vld [vmem:[#allocation2 + $0xc8] sm:$0xff] }
  0xe1   : > { %v712_v33 = vpop.f32.mrf.mxu0  ;;  %v1056_v34 = vmax.f32 %v1024_v27, 0.0 }
  0xe2   : > { %v802_v36 = vadd.f32 %v801_v46, %v712_v33  ;;  %v886_v38 = vadd.f32 %v840_v31, %v368_v29  ;;  %v1041_v40 = vmax.f32 %v1009_v35, 0.0 }
  0xe3   : > { %v1088_v39 = vpack.c.bf16 %v1056_v34, %v1056_v34  ;;  %v356_v34 = vld [vmem:[#allocation2 + $0x50] sm:$0xff] }
  0xe4   : > { %v871_v41 = vadd.f32 %v802_v36, %v353_v32  ;;  %919 = vst.msk [vmem:[#allocation2 + $0xb0] sm:$0xff] %vm313_vm3, %v886_v38  ;;  %v1073_v42 = vpack.c.bf16 %v1041_v40, %v1041_v40  ;;  %v953_v43 = vld [vmem:[#allocation2 + $0xa8] sm:$0xff] }
  0xe5   : > { %1121 = vst.msk [vmem:[%s1775_s29 + $0x50] sm:$0xf] %vm1100_vm4, %v1088_v39  ;;  %v989_v45 = vmul.f32 %v1759_v62, %v953_v43 }
  0xe6   : > { %v938_v47 = vld [vmem:[#allocation2 + $0x30] sm:$0xff]  ;;  %904 = vst.msk [vmem:[#allocation2 + $0x38] sm:$0xff] %vm313_vm3, %v871_v41 }
  0xe7   : > { %v1819_v44 = vpop.f32.mrf.mxu1  ;;  %1106 = vst.msk [vmem:[%s1775_s29 + $0x14] sm:$0xf] %vm1100_vm4, %v1073_v42  ;;  %v974_v46 = vmul.f32 %v1759_v62, %v938_v47  ;;  %v752_v49 = vpop.f32.mrf.mxu2  ;;  %v1025_v50 = vadd.f32 %v1764_v0, %v989_v45 }
  0xe8   : > { %v842_v51 = vadd.f32 %v841_v12, %v752_v49 }
  0xe9   : > { %v715_v53 = vpop.f32.mrf.mxu0  ;;  %v1010_v54 = vadd.f32 %v1764_v0, %v974_v46  ;;  %v1057_v56 = vmax.f32 %v1025_v50, 0.0  ;;  %v851_v50 = vpop.f32.mrf.mxu3 }
  0xea   : > { %v805_v55 = vadd.f32 %v804_v7, %v715_v53  ;;  %v887_v57 = vadd.f32 %v842_v51, %v369_v48 }
  0xeb   : > { %v1042_v59 = vmax.f32 %v1010_v54, 0.0  ;;  %v954_v60 = vld [vmem:[#allocation2 + $0xb0] sm:$0xff]  ;;  %v1089_v1 = vpack.c.bf16 %v1057_v56, %v1057_v56 }
  0xec   : > { %v872_v61 = vadd.f32 %v805_v55, %v354_v52  ;;  %v990_v2 = vmul.f32 %v1759_v62, %v954_v60  ;;  %920 = vst.msk [vmem:[#allocation2 + $0xb8] sm:$0xff] %vm313_vm3, %v887_v57  ;;  %v357_v52 = vld [vmem:[#allocation2 + $0x58] sm:$0xff] }
  0xed   : > { %v1074_v3 = vpack.c.bf16 %v1042_v59, %v1042_v59  ;;  %v939_v4 = vld [vmem:[#allocation2 + $0x38] sm:$0xff]  ;;  %1122 = vst.msk [vmem:[%s1775_s29 + $0x54] sm:$0xf] %vm1100_vm4, %v1089_v1 }
  0xee   : > { %905 = vst.msk [vmem:[#allocation2 + $0x40] sm:$0xff] %vm313_vm3, %v872_v61  ;;  %v1026_v7 = vadd.f32 %v1764_v0, %v990_v2  ;;  %v975_v8 = vmul.f32 %v1759_v62, %v939_v4 }
  0xef   : > { %v811_v5 = vpop.f32.mrf.mxu1  ;;  %1107 = vst.msk [vmem:[%s1775_s29 + $0x18] sm:$0xf] %vm1100_vm4, %v1074_v3  ;;  %v755_v10 = vpop.f32.mrf.mxu2 }
  0xf0   : > { %v1058_v11 = vmax.f32 %v1026_v7, 0.0  ;;  %v1011_v12 = vadd.f32 %v1764_v0, %v975_v8  ;;  %v845_v13 = vadd.f32 %v844_v37, %v755_v10  ;;  %v373_v7 = vld [vmem:[#allocation2 + $0xd8] sm:$0xff] }
  0xf1   : > { %v717_v15 = vpop.f32.mrf.mxu0 }
  0xf2   : > { %v807_v16 = vadd.f32 %v806_v25, %v717_v15  ;;  %v1090_v17 = vpack.c.bf16 %v1058_v11, %v1058_v11  ;;  %v1043_v18 = vmax.f32 %v1011_v12, 0.0  ;;  %v888_v19 = vadd.f32 %v845_v13, %v370_v9  ;;  %v358_v11 = vld [vmem:[#allocation2 + $0x60] sm:$0xff] }
  0xf3   : > { %v955_v20 = vld [vmem:[#allocation2 + $0xb8] sm:$0xff] }
  0xf4   : > { %v873_v21 = vadd.f32 %v807_v16, %v355_v14  ;;  %1123 = vst.msk [vmem:[%s1775_s29 + $0x58] sm:$0xf] %vm1100_vm4, %v1090_v17  ;;  %v1075_v22 = vpack.c.bf16 %v1043_v18, %v1043_v18  ;;  %v991_v23 = vmul.f32 %v1759_v62, %v955_v20  ;;  %v854_v14 = vpop.f32.mrf.mxu3 }
  0xf5   : > { %v940_v24 = vld [vmem:[#allocation2 + $0x40] sm:$0xff]  ;;  %921 = vst.msk [vmem:[#allocation2 + $0xc0] sm:$0xff] %vm313_vm3, %v888_v19 }
  0xf6   : > { %v976_v26 = vmul.f32 %v1759_v62, %v940_v24  ;;  %1108 = vst.msk [vmem:[%s1775_s29 + $0x1c] sm:$0xf] %vm1100_vm4, %v1075_v22  ;;  %v1027_v25 = vadd.f32 %v1764_v0, %v991_v23 }
  0xf7   : > { %v814_v27 = vpop.f32.mrf.mxu1  ;;  %906 = vst.msk [vmem:[#allocation2 + $0x48] sm:$0xff] %vm313_vm3, %v873_v21  ;;  %v757_v31 = vpop.f32.mrf.mxu2 }
  0xf8   : > { %v1012_v29 = vadd.f32 %v1764_v0, %v976_v26  ;;  %v1059_v32 = vmax.f32 %v1027_v25, 0.0  ;;  %v847_v33 = vadd.f32 %v846_v63, %v757_v31  ;;  %v374_v25 = vld [vmem:[#allocation2 + $0xe0] sm:$0xff] }
  0xf9   : > { %v720_v35 = vpop.f32.mrf.mxu0 }
  0xfa   : > { %v1044_v36 = vmax.f32 %v1012_v29, 0.0  ;;  %v810_v37 = vadd.f32 %v1819_v44, %v720_v35  ;;  %v1091_v38 = vpack.c.bf16 %v1059_v32, %v1059_v32  ;;  %v889_v39 = vadd.f32 %v847_v33, %v371_v30  ;;  %v372_v44 = vld [vmem:[#allocation2 + $0xd0] sm:$0xff]  ;;  %v359_v33 = vld [vmem:[#allocation2 + $0x68] sm:$0xff] }
  0xfc   : > { %v1076_v40 = vpack.c.bf16 %v1044_v36, %v1044_v36  ;;  %v874_v41 = vadd.f32 %v810_v37, %v356_v34  ;;  %1124 = vst.msk [vmem:[%s1775_s29 + $0x5c] sm:$0xf] %vm1100_vm4, %v1091_v38  ;;  %v956_v42 = vld [vmem:[#allocation2 + $0xc0] sm:$0xff] }
  0xfd   : > { %v992_v43 = vmul.f32 %v1759_v62, %v956_v42  ;;  %922 = vst.msk [vmem:[#allocation2 + $0xc8] sm:$0xff] %vm313_vm3, %v889_v39 }
  0xfe   : > { %1109 = vst.msk [vmem:[%s1775_s29 + $0x20] sm:$0xf] %vm1100_vm4, %v1076_v40  ;;  %v941_v47 = vld [vmem:[#allocation2 + $0x48] sm:$0xff]  ;;  %v856_v40 = vpop.f32.mrf.mxu3 }
  0xff   : > { %v816_v45 = vpop.f32.mrf.mxu1  ;;  %v1028_v46 = vadd.f32 %v1764_v0, %v992_v43  ;;  %v977_v48 = vmul.f32 %v1759_v62, %v941_v47  ;;  %907 = vst.msk [vmem:[#allocation2 + $0x50] sm:$0xff] %vm313_vm3, %v874_v41  ;;  %v760_v49 = vpop.f32.mrf.mxu2 }
 0x100   : > { %v850_v51 = vadd.f32 %v849_v28, %v760_v49 }
 0x101   : > { %v722_v53 = vpop.f32.mrf.mxu0  ;;  %v1060_v54 = vmax.f32 %v1028_v46, 0.0  ;;  %v1013_v55 = vadd.f32 %v1764_v0, %v977_v48  ;;  %v362_v48 = vld [vmem:[#allocation2 + $0x80] sm:$0xff] }
 0x102   : > { %v812_v56 = vadd.f32 %v811_v5, %v722_v53  ;;  %v890_v57 = vadd.f32 %v850_v51, %v372_v44  ;;  %v375_v51 = vld [vmem:[#allocation2 + $0xe8] sm:$0xff] }
 0x103   : > { %v1092_v59 = vpack.c.bf16 %v1060_v54, %v1060_v54  ;;  %v1045_v60 = vmax.f32 %v1013_v55, 0.0 }
 0x104   : > { %v875_v61 = vadd.f32 %v812_v56, %v357_v52  ;;  %923 = vst.msk [vmem:[#allocation2 + $0xd0] sm:$0xff] %vm313_vm3, %v890_v57  ;;  %v957_v1 = vld [vmem:[#allocation2 + $0xc8] sm:$0xff]  ;;  %v360_v56 = vld [vmem:[#allocation2 + $0x70] sm:$0xff] }
 0x105   : > { %1125 = vst.msk [vmem:[%s1775_s29 + $0x60] sm:$0xf] %vm1100_vm4, %v1092_v59  ;;  %v1077_v63 = vpack.c.bf16 %v1045_v60, %v1045_v60  ;;  %v993_v3 = vmul.f32 %v1759_v62, %v957_v1 }
 0x106   : > { %v942_v4 = vld [vmem:[#allocation2 + $0x50] sm:$0xff]  ;;  %908 = vst.msk [vmem:[#allocation2 + $0x58] sm:$0xff] %vm313_vm3, %v875_v61 }
 0x107   : > { %v1862_v2 = vpop.f32.mrf.mxu1  ;;  %1110 = vst.msk [vmem:[%s1775_s29 + $0x24] sm:$0xf] %vm1100_vm4, %v1077_v63  ;;  %v978_v5 = vmul.f32 %v1759_v62, %v942_v4  ;;  %v762_v8 = vpop.f32.mrf.mxu2  ;;  %v1029_v9 = vadd.f32 %v1764_v0, %v993_v3 }
 0x108   : > { %v852_v10 = vadd.f32 %v851_v50, %v762_v8 }
 0x109   : > { %v725_v12 = vpop.f32.mrf.mxu0  ;;  %v1014_v13 = vadd.f32 %v1764_v0, %v978_v5  ;;  %v1061_v16 = vmax.f32 %v1029_v9, 0.0  ;;  %v859_v5 = vpop.f32.mrf.mxu3 }
 0x10a   : > { %v815_v15 = vadd.f32 %v814_v27, %v725_v12  ;;  %v891_v17 = vadd.f32 %v852_v10, %v373_v7  ;;  %v363_v7 = vld [vmem:[#allocation2 + $0x88] sm:$0xff]  ;;  %v376_v12 = vld [vmem:[#allocation2 + $0xf0] sm:$0xff] }
 0x10b   : > { %v1046_v18 = vmax.f32 %v1014_v13, 0.0  ;;  %v958_v19 = vld [vmem:[#allocation2 + $0xd0] sm:$0xff]  ;;  %v1093_v21 = vpack.c.bf16 %v1061_v16, %v1061_v16  ;;  %v361_v16 = vld [vmem:[#allocation2 + $0x78] sm:$0xff] }
 0x10c   : > { %v876_v20 = vadd.f32 %v815_v15, %v358_v11  ;;  %v994_v22 = vmul.f32 %v1759_v62, %v958_v19  ;;  %924 = vst.msk [vmem:[#allocation2 + $0xd8] sm:$0xff] %vm313_vm3, %v891_v17 }
 0x10d   : > { %v1078_v23 = vpack.c.bf16 %v1046_v18, %v1046_v18  ;;  %v943_v24 = vld [vmem:[#allocation2 + $0x58] sm:$0xff]  ;;  %1126 = vst.msk [vmem:[%s1775_s29 + $0x64] sm:$0xf] %vm1100_vm4, %v1093_v21 }
 0x10e   : > { %909 = vst.msk [vmem:[#allocation2 + $0x60] sm:$0xff] %vm313_vm3, %v876_v20  ;;  %v1030_v27 = vadd.f32 %v1764_v0, %v994_v22  ;;  %v979_v28 = vmul.f32 %v1759_v62, %v943_v24 }
 0x10f   : > { %v1874_v26 = vpop.f32.mrf.mxu1  ;;  %1111 = vst.msk [vmem:[%s1775_s29 + $0x28] sm:$0xf] %vm1100_vm4, %v1078_v23  ;;  %v765_v29 = vpop.f32.mrf.mxu2 }
 0x110   : > { %v1062_v30 = vmax.f32 %v1030_v27, 0.0  ;;  %v1015_v31 = vadd.f32 %v1764_v0, %v979_v28  ;;  %v855_v32 = vadd.f32 %v854_v14, %v765_v29 }
 0x111   : > { %v727_v34 = vpop.f32.mrf.mxu0 }
 0x112   : > { %v817_v35 = vadd.f32 %v816_v45, %v727_v34  ;;  %v1094_v36 = vpack.c.bf16 %v1062_v30, %v1062_v30  ;;  %v1047_v37 = vmax.f32 %v1015_v31, 0.0  ;;  %v892_v38 = vadd.f32 %v855_v32, %v374_v25  ;;  %v377_v34 = vld [vmem:[#allocation2 + $0xf8] sm:$0xff] }
 0x113   : > { %v959_v39 = vld [vmem:[#allocation2 + $0xd8] sm:$0xff] }
 0x114   : > { %v877_v41 = vadd.f32 %v817_v35, %v359_v33  ;;  %1127 = vst.msk [vmem:[%s1775_s29 + $0x68] sm:$0xf] %vm1100_vm4, %v1094_v36  ;;  %v1079_v42 = vpack.c.bf16 %v1047_v37, %v1047_v37  ;;  %v995_v43 = vmul.f32 %v1759_v62, %v959_v39  ;;  %v861_v33 = vpop.f32.mrf.mxu3 }
 0x115   : > { %v944_v47 = vld [vmem:[#allocation2 + $0x60] sm:$0xff]  ;;  %925 = vst.msk [vmem:[#allocation2 + $0xe0] sm:$0xff] %vm313_vm3, %v892_v38 }
 0x116   : > { %v980_v46 = vmul.f32 %v1759_v62, %v944_v47  ;;  %1112 = vst.msk [vmem:[%s1775_s29 + $0x2c] sm:$0xf] %vm1100_vm4, %v1079_v42  ;;  %v1031_v45 = vadd.f32 %v1764_v0, %v995_v43 }
 0x117   : > { %v824_v44 = vpop.f32.mrf.mxu1  ;;  %910 = vst.msk [vmem:[#allocation2 + $0x68] sm:$0xff] %vm313_vm3, %v877_v41  ;;  %v767_v52 = vpop.f32.mrf.mxu2 }
 0x118   : > { %v825_v49 = vadd.f32 %v824_v44, %v1754_v58  ;;  %v1016_v50 = vadd.f32 %v1764_v0, %v980_v46  ;;  %v1063_v53 = vmax.f32 %v1031_v45, 0.0  ;;  %v857_v55 = vadd.f32 %v856_v40, %v767_v52 }
 0x119   : > { %v730_v57 = vpop.f32.mrf.mxu0 }
 0x11a   : > { %v880_v54 = vadd.f32 %v825_v49, %v362_v48  ;;  %v1048_v59 = vmax.f32 %v1016_v50, 0.0  ;;  %v820_v60 = vadd.f32 %v1862_v2, %v730_v57  ;;  %v1095_v61 = vpack.c.bf16 %v1063_v53, %v1063_v53 }
 0x11b   : > { %v893_v58 = vadd.f32 %v857_v55, %v375_v51 }
 0x11c   : > { %913 = vst.msk [vmem:[#allocation2 + $0x80] sm:$0xff] %vm313_vm3, %v880_v54  ;;  %v1080_v63 = vpack.c.bf16 %v1048_v59, %v1048_v59  ;;  %v878_v1 = vadd.f32 %v820_v60, %v360_v56  ;;  %v960_v3 = vld [vmem:[#allocation2 + $0xe0] sm:$0xff] }
 0x11d   : > { %1128 = vst.msk [vmem:[%s1775_s29 + $0x6c] sm:$0xf] %vm1100_vm4, %v1095_v61  ;;  %v996_v4 = vmul.f32 %v1759_v62, %v960_v3 }
 0x11e   : > { %1113 = vst.msk [vmem:[%s1775_s29 + $0x30] sm:$0xf] %vm1100_vm4, %v1080_v63  ;;  %v945_v9 = vld [vmem:[#allocation2 + $0x68] sm:$0xff] }
 0x11f   : > { %v826_v8 = vpop.f32.mrf.mxu1  ;;  %926 = vst.msk [vmem:[#allocation2 + $0xe8] sm:$0xff] %vm313_vm3, %v893_v58  ;;  %v1032_v10 = vadd.f32 %v1764_v0, %v996_v4  ;;  %v981_v11 = vmul.f32 %v1759_v62, %v945_v9  ;;  %v770_v13 = vpop.f32.mrf.mxu2 }
 0x120   : > { %v827_v2 = vadd.f32 %v826_v8, %v1770_v6  ;;  %911 = vst.msk [vmem:[#allocation2 + $0x70] sm:$0xff] %vm313_vm3, %v878_v1  ;;  %v860_v15 = vadd.f32 %v859_v5, %v770_v13 }
 0x121   : > { %v732_v17 = vpop.f32.mrf.mxu0  ;;  %v1064_v18 = vmax.f32 %v1032_v10, 0.0  ;;  %v1017_v19 = vadd.f32 %v1764_v0, %v981_v11 }
 0x122   : > { %v881_v14 = vadd.f32 %v827_v2, %v363_v7  ;;  %v822_v21 = vadd.f32 %v1874_v26, %v732_v17  ;;  %v894_v22 = vadd.f32 %v860_v15, %v376_v12 }
 0x123   : > { %v948_v20 = vld [vmem:[#allocation2 + $0x80] sm:$0xff]  ;;  %v1096_v23 = vpack.c.bf16 %v1064_v18, %v1064_v18  ;;  %v1049_v24 = vmax.f32 %v1017_v19, 0.0 }
 0x124   : > { %v984_v6 = vmul.f32 %v1759_v62, %v948_v20  ;;  %914 = vst.msk [vmem:[#allocation2 + $0x88] sm:$0xff] %vm313_vm3, %v881_v14  ;;  %v879_v27 = vadd.f32 %v822_v21, %v361_v16 }
 0x125   : > { %927 = vst.msk [vmem:[#allocation2 + $0xf0] sm:$0xff] %vm313_vm3, %v894_v22  ;;  %v1081_v25 = vpack.c.bf16 %v1049_v24, %v1049_v24 }
 0x126   : > { %v1020_v28 = vadd.f32 %v1764_v0, %v984_v6  ;;  %1129 = vst.msk [vmem:[%s1775_s29 + $0x70] sm:$0xf] %vm1100_vm4, %v1096_v23  ;;  %v961_v29 = vld [vmem:[#allocation2 + $0xe8] sm:$0xff] }
 0x127   : > { %v997_v26 = vmul.f32 %v1759_v62, %v961_v29  ;;  %v946_v31 = vld [vmem:[#allocation2 + $0x70] sm:$0xff]  ;;  %912 = vst.msk [vmem:[#allocation2 + $0x78] sm:$0xff] %vm313_vm3, %v879_v27  ;;  %v772_v35 = vpop.f32.mrf.mxu2 }
 0x128   : > { %v1052_v30 = vmax.f32 %v1020_v28, 0.0  ;;  %1114 = vst.msk [vmem:[%s1775_s29 + $0x34] sm:$0xf] %vm1100_vm4, %v1081_v25  ;;  %v982_v32 = vmul.f32 %v1759_v62, %v946_v31  ;;  %v862_v38 = vadd.f32 %v861_v33, %v772_v35 }
 0x129   : > { %v1033_v37 = vadd.f32 %v1764_v0, %v997_v26 }
 0x12a   : > { %v1084_v36 = vpack.c.bf16 %v1052_v30, %v1052_v30  ;;  %v1018_v39 = vadd.f32 %v1764_v0, %v982_v32  ;;  %v895_v43 = vadd.f32 %v862_v38, %v377_v34 }
 0x12b   : > { %v949_v40 = vld [vmem:[#allocation2 + $0x88] sm:$0xff]  ;;  %v1065_v41 = vmax.f32 %v1033_v37, 0.0 }
 0x12c   : > { %1117 = vst.msk [vmem:[%s1775_s29 + $0x40] sm:$0xf] %vm1100_vm4, %v1084_v36  ;;  %v985_v42 = vmul.f32 %v1759_v62, %v949_v40  ;;  %v1050_v47 = vmax.f32 %v1018_v39, 0.0  ;;  %v962_v46 = vld [vmem:[#allocation2 + $0xf0] sm:$0xff] }
 0x12d   : > { %v1097_v48 = vpack.c.bf16 %v1065_v41, %v1065_v41  ;;  %v998_v45 = vmul.f32 %v1759_v62, %v962_v46  ;;  %928 = vst.msk [vmem:[#allocation2 + $0xf8] sm:$0xff] %vm313_vm3, %v895_v43 }
 0x12e   : > { %v1021_v44 = vadd.f32 %v1764_v0, %v985_v42  ;;  %v1082_v49 = vpack.c.bf16 %v1050_v47, %v1050_v47  ;;  %v947_v50 = vld [vmem:[#allocation2 + $0x78] sm:$0xff] }
 0x12f   : > { %1130 = vst.msk [vmem:[%s1775_s29 + $0x74] sm:$0xf] %vm1100_vm4, %v1097_v48  ;;  %v1034_v52 = vadd.f32 %v1764_v0, %v998_v45  ;;  %v983_v53 = vmul.f32 %v1759_v62, %v947_v50 }
 0x130   : > { %v1053_v51 = vmax.f32 %v1021_v44, 0.0  ;;  %1115 = vst.msk [vmem:[%s1775_s29 + $0x38] sm:$0xf] %vm1100_vm4, %v1082_v49 }
 0x131   : > { %v1066_v55 = vmax.f32 %v1034_v52, 0.0  ;;  %v1019_v56 = vadd.f32 %v1764_v0, %v983_v53 }
 0x132   : > { %v1085_v54 = vpack.c.bf16 %v1053_v51, %v1053_v51 }
 0x133   : > { %v1098_v57 = vpack.c.bf16 %v1066_v55, %v1066_v55  ;;  %v1051_v59 = vmax.f32 %v1019_v56, 0.0 }
 0x134   : > { %1118 = vst.msk [vmem:[%s1775_s29 + $0x44] sm:$0xf] %vm1100_vm4, %v1085_v54  ;;  %v963_v60 = vld [vmem:[#allocation2 + $0xf8] sm:$0xff] }
 0x135   : > { %1131 = vst.msk [vmem:[%s1775_s29 + $0x78] sm:$0xf] %vm1100_vm4, %v1098_v57  ;;  %v1083_v61 = vpack.c.bf16 %v1051_v59, %v1051_v59  ;;  %v999_v58 = vmul.f32 %v1759_v62, %v963_v60 }
 0x137   : > { %1116 = vst.msk [vmem:[%s1775_s29 + $0x3c] sm:$0xf] %vm1100_vm4, %v1083_v61  ;;  %v1035_v63 = vadd.f32 %v1764_v0, %v999_v58 }
 0x139   : > { %v1067_v1 = vmax.f32 %v1035_v63, 0.0 }
 0x13b   : > { %v1099_v3 = vpack.c.bf16 %v1067_v1, %v1067_v1 }
 0x13d   : > { %1132 = vst.msk [vmem:[%s1775_s29 + $0x7c] sm:$0xf] %vm1100_vm4, %v1099_v3 }
 0x13e PF: > { %s14_s17 = sadd.s32 1, %s1556_s17   ;;  %s1958_s15 = smov %s1552_s16 }
 0x13f   : > { %p11_p5 = scmp.ge.s32.totalorder %s14_s17, 4   ;;  %s1959_s16 = smov %s1961_s18 }
 0x141   :  { %13 = sbr.rel (!%p11_p5) target bundleno = 2 (0x2), region = 83 }

</bundles_post_ra>
